<compile_context>
chip_gen: v6e
topology: v6e:2x2x1
jax: 0.10.0
libtpu: 0.0.40
codegen_flags: <defaults>
</compile_context>

<pallas_src>
import jax
import jax.numpy as jnp
from jax.experimental import pallas as pl
from jax.experimental.pallas import tpu as pltpu

STATE_SIZE = 5
ACTION_SIZE = 2
HIDDEN = 128


def actor_kernel(x_ref, w1_ref, b1_ref, w2_ref, b2_ref, w3_ref, b3_ref, o_ref):
    # fc1 + relu  (bf16 operands, f32 accumulation)
    x = x_ref[...].astype(jnp.bfloat16)                                 # (TB, 5)
    h1 = jnp.dot(x, w1_ref[...], preferred_element_type=jnp.float32)    # (TB, 128)
    h1 = jnp.maximum(h1 + b1_ref[...], 0.0)
    # fc2 + relu
    h2 = jnp.dot(h1.astype(jnp.bfloat16), w2_ref[...],
                 preferred_element_type=jnp.float32)                    # (TB, 128)
    h2 = jnp.maximum(h2 + b2_ref[...], 0.0)
    # mu (lane-dense, padded to 128 outputs) + tanh, scaled by 0.1
    y = jnp.dot(h2.astype(jnp.bfloat16), w3_ref[...],
                preferred_element_type=jnp.float32)                     # (TB, 128)
    y = jnp.tanh(y + b3_ref[...]) * 0.1
    o_ref[...] = y.astype(o_ref.dtype)


def actor_forward(state, params, *, tb=128):
    """state: (B, STATE_SIZE) f32; params: dict of w1,b1,w2,b2,w3,b3 (f32)."""
    B = state.shape[0]
    B_pad = ((B + tb - 1) // tb) * tb
    if B_pad != B:
        state = jnp.pad(state, ((0, B_pad - B), (0, 0)))

    # bf16 weights (halves weight DMA bytes, native MXU dtype); f32 biases
    # (added onto the f32 accumulator).
    w1 = params["w1"].astype(jnp.bfloat16)
    w2 = params["w2"].astype(jnp.bfloat16)
    b1, b2 = params["b1"], params["b2"]
    # Lane-dense last layer: zero-pad (128, 2) -> (128, 128), (1, 2) -> (1, 128).
    w3 = jnp.pad(params["w3"],
                 ((0, 0), (0, HIDDEN - ACTION_SIZE))).astype(jnp.bfloat16)
    b3 = jnp.pad(params["b3"], ((0, 0), (0, HIDDEN - ACTION_SIZE)))

    const = lambda shape: pl.BlockSpec(shape, lambda i: tuple(0 for _ in shape))

    out = pl.pallas_call(
        actor_kernel,
        out_shape=jax.ShapeDtypeStruct((B_pad, HIDDEN), jnp.float32),
        grid=(B_pad // tb,),
        in_specs=[
            pl.BlockSpec((tb, STATE_SIZE), lambda i: (i, 0)),   # state tiles batch
            const((STATE_SIZE, HIDDEN)), const((1, HIDDEN)),    # fc1 (resident)
            const((HIDDEN, HIDDEN)), const((1, HIDDEN)),        # fc2 (resident)
            const((HIDDEN, HIDDEN)), const((1, HIDDEN)),        # mu  (resident)
        ],
        out_specs=pl.BlockSpec((tb, HIDDEN), lambda i: (i, 0)),
        compiler_params=pltpu.CompilerParams(
            dimension_semantics=("parallel",)),
    )(state, w1, b1, w2, b2, w3, b3)

    return out[:B, :ACTION_SIZE]


def init_params(key):
    """Deterministic init mirroring torch.nn.Linear default (U[-1/sqrt(fan_in), +])."""
    ks = jax.random.split(key, 6)

    def linear(kw, kb, fan_in, fan_out):
        bound = 1.0 / jnp.sqrt(jnp.float32(fan_in))
        w = jax.random.uniform(kw, (fan_in, fan_out), jnp.float32, -bound, bound)
        b = jax.random.uniform(kb, (1, fan_out), jnp.float32, -bound, bound)
        return w, b

    w1, b1 = linear(ks[0], ks[1], STATE_SIZE, HIDDEN)
    w2, b2 = linear(ks[2], ks[3], HIDDEN, HIDDEN)
    w3, b3 = linear(ks[4], ks[5], HIDDEN, ACTION_SIZE)
    return {"w1": w1, "b1": b1, "w2": w2, "b2": b2, "w3": w3, "b3": b3}


def actor_reference(state, params):
    h1 = jnp.maximum(state @ params["w1"] + params["b1"], 0.0)
    h2 = jnp.maximum(h1 @ params["w2"] + params["b2"], 0.0)
    return jnp.tanh(h2 @ params["w3"] + params["b3"]) / 10.0


if __name__ == "__main__":
    key = jax.random.PRNGKey(0)
    kp, kx = jax.random.split(key)
    params = init_params(kp)

    batch = 8
    state = jax.random.normal(kx, (batch, STATE_SIZE), jnp.float32)

    out = actor_forward(state, params)
    out = jax.block_until_ready(out)

    ref = actor_reference(state, params)
    assert out.shape == (batch, ACTION_SIZE), out.shape
    # bf16 MXU operands (f32 accumulation) vs f32 reference -> loosened tolerance.
    assert jnp.allclose(out, ref, atol=5e-3, rtol=5e-2), (out, ref)

    print("KERNEL_OK")
</pallas_src>

<mosaic_0001>
module attributes {stable_mosaic.version = 11 : i64} {
  func.func @actor_kernel(%arg0: i32, %arg1: memref<128x5xf32, #tpu.memory_space<vmem>>, %arg2: memref<5x128xbf16, #tpu.memory_space<vmem>>, %arg3: memref<1x128xf32, #tpu.memory_space<vmem>>, %arg4: memref<128x128xbf16, #tpu.memory_space<vmem>>, %arg5: memref<1x128xf32, #tpu.memory_space<vmem>>, %arg6: memref<128x128xbf16, #tpu.memory_space<vmem>>, %arg7: memref<1x128xf32, #tpu.memory_space<vmem>>, %arg8: memref<128x128xf32, #tpu.memory_space<vmem>>) attributes {dimension_semantics = [#tpu.dimension_semantics<parallel>], iteration_bounds = array<i64: 1>, scalar_prefetch = 0 : i64, scratch_operands = 0 : i64, tpu.core_type = #tpu.core_type<tc>, window_params = [{transform_indices = @transform_0, window_bounds = array<i64: 128, 5>}, {pipeline_mode = #tpu.pipeline_mode<synchronous>, transform_indices = @transform_1, window_bounds = array<i64: 5, 128>}, {pipeline_mode = #tpu.pipeline_mode<synchronous>, transform_indices = @transform_2, window_bounds = array<i64: 1, 128>}, {pipeline_mode = #tpu.pipeline_mode<synchronous>, transform_indices = @transform_3, window_bounds = array<i64: 128, 128>}, {pipeline_mode = #tpu.pipeline_mode<synchronous>, transform_indices = @transform_4, window_bounds = array<i64: 1, 128>}, {pipeline_mode = #tpu.pipeline_mode<synchronous>, transform_indices = @transform_5, window_bounds = array<i64: 128, 128>}, {pipeline_mode = #tpu.pipeline_mode<synchronous>, transform_indices = @transform_6, window_bounds = array<i64: 1, 128>}, {transform_indices = @transform_7, window_bounds = array<i64: 128, 128>}]} {
    %c0 = arith.constant 0 : index
    %c0_0 = arith.constant 0 : index
    %0 = vector.load %arg1[%c0, %c0_0] : memref<128x5xf32, #tpu.memory_space<vmem>>, vector<128x5xf32>
    %1 = arith.truncf %0 : vector<128x5xf32> to vector<128x5xbf16>
    %c0_1 = arith.constant 0 : index
    %c0_2 = arith.constant 0 : index
    %2 = vector.load %arg2[%c0_1, %c0_2] : memref<5x128xbf16, #tpu.memory_space<vmem>>, vector<5x128xbf16>
    %cst = arith.constant dense<0.000000e+00> : vector<128x128xf32>
    %3 = tpu.matmul %1, %2, %cst {dimension_numbers = #tpu.dot_dimension_numbers<[1], [0], [0], [1], [0, 0, 1, 1], [], []>} : vector<128x5xbf16>, vector<5x128xbf16>, vector<128x128xf32> -> vector<128x128xf32>
    %c0_3 = arith.constant 0 : index
    %c0_4 = arith.constant 0 : index
    %4 = vector.load %arg3[%c0_3, %c0_4] : memref<1x128xf32, #tpu.memory_space<vmem>>, vector<1x128xf32>
    %5 = vector.broadcast %4 : vector<1x128xf32> to vector<128x128xf32>
    %6 = arith.addf %3, %5 : vector<128x128xf32>
    %cst_5 = arith.constant 0.000000e+00 : f32
    %7 = vector.broadcast %cst_5 : f32 to vector<128x128xf32>
    %8 = arith.maximumf %6, %7 : vector<128x128xf32>
    %9 = arith.truncf %8 : vector<128x128xf32> to vector<128x128xbf16>
    %c0_6 = arith.constant 0 : index
    %c0_7 = arith.constant 0 : index
    %10 = vector.load %arg4[%c0_6, %c0_7] : memref<128x128xbf16, #tpu.memory_space<vmem>>, vector<128x128xbf16>
    %cst_8 = arith.constant dense<0.000000e+00> : vector<128x128xf32>
    %11 = tpu.matmul %9, %10, %cst_8 {dimension_numbers = #tpu.dot_dimension_numbers<[1], [0], [0], [1], [0, 0, 1, 1], [], []>} : vector<128x128xbf16>, vector<128x128xbf16>, vector<128x128xf32> -> vector<128x128xf32>
    %c0_9 = arith.constant 0 : index
    %c0_10 = arith.constant 0 : index
    %12 = vector.load %arg5[%c0_9, %c0_10] : memref<1x128xf32, #tpu.memory_space<vmem>>, vector<1x128xf32>
    %13 = vector.broadcast %12 : vector<1x128xf32> to vector<128x128xf32>
    %14 = arith.addf %11, %13 : vector<128x128xf32>
    %cst_11 = arith.constant 0.000000e+00 : f32
    %15 = vector.broadcast %cst_11 : f32 to vector<128x128xf32>
    %16 = arith.maximumf %14, %15 : vector<128x128xf32>
    %17 = arith.truncf %16 : vector<128x128xf32> to vector<128x128xbf16>
    %c0_12 = arith.constant 0 : index
    %c0_13 = arith.constant 0 : index
    %18 = vector.load %arg6[%c0_12, %c0_13] : memref<128x128xbf16, #tpu.memory_space<vmem>>, vector<128x128xbf16>
    %cst_14 = arith.constant dense<0.000000e+00> : vector<128x128xf32>
    %19 = tpu.matmul %17, %18, %cst_14 {dimension_numbers = #tpu.dot_dimension_numbers<[1], [0], [0], [1], [0, 0, 1, 1], [], []>} : vector<128x128xbf16>, vector<128x128xbf16>, vector<128x128xf32> -> vector<128x128xf32>
    %c0_15 = arith.constant 0 : index
    %c0_16 = arith.constant 0 : index
    %20 = vector.load %arg7[%c0_15, %c0_16] : memref<1x128xf32, #tpu.memory_space<vmem>>, vector<1x128xf32>
    %21 = vector.broadcast %20 : vector<1x128xf32> to vector<128x128xf32>
    %22 = arith.addf %19, %21 : vector<128x128xf32>
    %23 = math.tanh %22 : vector<128x128xf32>
    %cst_17 = arith.constant 1.000000e-01 : f32
    %24 = vector.broadcast %cst_17 : f32 to vector<128x128xf32>
    %25 = arith.mulf %23, %24 : vector<128x128xf32>
    %c0_18 = arith.constant 0 : index
    %c0_19 = arith.constant 0 : index
    %26 = vector.load %arg8[%c0_18, %c0_19] : memref<128x128xf32, #tpu.memory_space<vmem>>, vector<128x128xf32>
    tpu.vector_store %arg8[%c0_18, %c0_19], %25 {strides = array<i32>} : memref<128x128xf32, #tpu.memory_space<vmem>>, vector<128x128xf32>,
    return
  }
  func.func @transform_0(%arg0: i32) -> (i32, i32) {
    %c0_i32 = arith.constant 0 : i32
    %c0_i32_0 = arith.constant 0 : i32
    return %arg0, %c0_i32 : i32, i32
  }
  func.func @transform_1(%arg0: i32) -> (i32, i32) {
    %c0_i32 = arith.constant 0 : i32
    %c0_i32_0 = arith.constant 0 : i32
    %c0_i32_1 = arith.constant 0 : i32
    return %c0_i32, %c0_i32_0 : i32, i32
  }
  func.func @transform_2(%arg0: i32) -> (i32, i32) {
    %c0_i32 = arith.constant 0 : i32
    %c0_i32_0 = arith.constant 0 : i32
    %c0_i32_1 = arith.constant 0 : i32
    return %c0_i32, %c0_i32_0 : i32, i32
  }
  func.func @transform_3(%arg0: i32) -> (i32, i32) {
    %c0_i32 = arith.constant 0 : i32
    %c0_i32_0 = arith.constant 0 : i32
    %c0_i32_1 = arith.constant 0 : i32
    return %c0_i32, %c0_i32_0 : i32, i32
  }
  func.func @transform_4(%arg0: i32) -> (i32, i32) {
    %c0_i32 = arith.constant 0 : i32
    %c0_i32_0 = arith.constant 0 : i32
    %c0_i32_1 = arith.constant 0 : i32
    return %c0_i32, %c0_i32_0 : i32, i32
  }
  func.func @transform_5(%arg0: i32) -> (i32, i32) {
    %c0_i32 = arith.constant 0 : i32
    %c0_i32_0 = arith.constant 0 : i32
    %c0_i32_1 = arith.constant 0 : i32
    return %c0_i32, %c0_i32_0 : i32, i32
  }
  func.func @transform_6(%arg0: i32) -> (i32, i32) {
    %c0_i32 = arith.constant 0 : i32
    %c0_i32_0 = arith.constant 0 : i32
    %c0_i32_1 = arith.constant 0 : i32
    return %c0_i32, %c0_i32_0 : i32, i32
  }
  func.func @transform_7(%arg0: i32) -> (i32, i32) {
    %c0_i32 = arith.constant 0 : i32
    %c0_i32_0 = arith.constant 0 : i32
    return %arg0, %c0_i32 : i32, i32
  }
}

</mosaic_0001>

<bundles_post_ra>
// kernel: tpu_custom_call.1
= control target key start
LH: loop header
LB: loop body
LE: loop exit
PB: predicated region body
PF: predicated region fallthrough
CT: control target
= control target key end

     0   :  { %vm85_vm0 = vcmask 1041408   ;;  %vm86_vm1 = vcmask 1042432   ;;  %v861_v2 = vmov 65535   ;;  %vm60_vm2 = vcmask 39936   ;;  %s1042_s0 = inlined_call_operand.vmem [shape: f32[128,5], index: 0, kind: input, shape index: {}]   ;;  %s1043_s1 = inlined_call_operand.vmem [shape: bf16[5,128], index: 1, kind: input, shape index: {}]   ;;  %s1044_s2 = inlined_call_operand.vmem [shape: f32[1,128], index: 2, kind: input, shape index: {}]   ;;  %s1045_s3 = inlined_call_operand.vmem [shape: bf16[128,128], index: 3, kind: input, shape index: {}]   ;;  %s1046_s4 = inlined_call_operand.vmem [shape: f32[1,128], index: 4, kind: input, shape index: {}]   ;;  %s1047_s5 = inlined_call_operand.vmem [shape: bf16[128,128], index: 5, kind: input, shape index: {}]   ;;  %s1048_s6 = inlined_call_operand.vmem [shape: f32[1,128], index: 6, kind: input, shape index: {}]   ;;  %s1049_s7 = inlined_call_operand.hbm [shape: f32[128,128], index: 7, kind: output, shape index: {}]  }
   0x1   :  { %v52_v0 = vld [vmem:[%s1043_s1] sm:$0x7]  ;;  %v87_v3 = vsel %vm85_vm0, 4294967295, %v861_v2  ;;  %v29_v4 = vld [vmem:[%s1042_s0 + $0x8] sm:$0xff]  ;;  %v30_v7 = vld [vmem:[%s1042_s0 + $0x10] sm:$0xff] }
   0x2   :  { %v28_v1 = vld [vmem:[%s1042_s0] sm:$0xff]  ;;  %v88_v5 = vsel %vm86_vm1, %v87_v3, 0  ;;  %v31_v8 = vld [vmem:[%s1042_s0 + $0x18] sm:$0xff]  ;;  %v33_v11 = vld [vmem:[%s1042_s0 + $0x28] sm:$0xff] }
   0x3   :  { %v44_v6 = vpack.c.bf16 %v29_v4, %v28_v1  ;;  %v90_v9 = vand.u32 %v88_v5, %v52_v0  ;;  %v32_v10 = vld [vmem:[%s1042_s0 + $0x20] sm:$0xff]  ;;  %v45_v12 = vpack.c.bf16 %v31_v8, %v30_v7  ;;  %v791_v14 = vld [vmem:[%s1045_s3 + $0x38] sm:$0xff]   ;;  %v792_v15 = vld [vmem:[%s1045_s3 + $0x30] sm:$0xff]  }
   0x4   :  { %v46_v13 = vpack.c.bf16 %v33_v11, %v32_v10  ;;  %v34_v16 = vld [vmem:[%s1042_s0 + $0x30] sm:$0xff]  ;;  %v35_v17 = vld [vmem:[%s1042_s0 + $0x38] sm:$0xff]  ;;  %723 = vmatprep.subr.bf16.mxu1 %v791_v14  ;;  %v36_v18 = vld [vmem:[%s1042_s0 + $0x40] sm:$0xff] }
   0x5   :  { %707 = vmatprep.mubr.msk.bf16.mxu0 %vm60_vm2, %v44_v6  ;;  %705 = vmatprep.subr.bf16.mxu0 %v90_v9  ;;  %v37_v19 = vld [vmem:[%s1042_s0 + $0x48] sm:$0xff]  ;;  %v794_v21 = vld [vmem:[%s1045_s3 + $0x20] sm:$0xff]   ;;  %v47_v22 = vpack.c.bf16 %v35_v17, %v34_v16  ;;  %v38_v24 = vld [vmem:[%s1042_s0 + $0x50] sm:$0xff] }
   0x6   :  { %706 = vmatpush3.bf16.msra.mxu0 %v90_v9  ;;  %724 = vmatpush3.bf16.msra.mxu1 %v791_v14  ;;  %v793_v20 = vld [vmem:[%s1045_s3 + $0x28] sm:$0xff]   ;;  %v48_v23 = vpack.c.bf16 %v37_v19, %v36_v18  ;;  %v39_v25 = vld [vmem:[%s1042_s0 + $0x58] sm:$0xff] }
   0x7   :  { %725 = vmatprep.subr.bf16.mxu1 %v792_v15  ;;  %v795_v26 = vld [vmem:[%s1045_s3 + $0x18] sm:$0xff]  }
   0x9   :  { %708 = vmatmul.mubr.msk.bf16.vlgmr.msra.gmra.mxu0 %vm60_vm2, %v45_v12 }
   0xa   :  { %711 = vmatprep.mubr.msk.bf16.mxu0 %vm60_vm2, %v46_v13  ;;  %726 = vmatpush3.bf16.msra.mxu1 %v792_v15 }
   0xb   :  { %727 = vmatprep.subr.bf16.mxu1 %v793_v20 }
   0xe   :  { %728 = vmatpush3.bf16.msra.mxu1 %v793_v20 }
   0xf   :  { %729 = vmatprep.subr.bf16.mxu1 %v794_v21 }
  0x11   :  { %712 = vmatmul.mubr.msk.bf16.gmra.mxu0 %vm60_vm2, %v47_v22 }
  0x12   :  { %715 = vmatprep.mubr.msk.bf16.mxu0 %vm60_vm2, %v48_v23 }
  0x13   :  { %12 = vsyncpa [#allocation3], 0  ;;  %v40_v27 = vld [vmem:[%s1042_s0 + $0x60] sm:$0xff]  ;;  %v41_v28 = vld [vmem:[%s1042_s0 + $0x68] sm:$0xff]  ;;  %v49_v29 = vpack.c.bf16 %v39_v25, %v38_v24  ;;  %730 = vmatpush3.bf16.msra.mxu1 %v794_v21 }
  0x14   :  { %v50_v30 = vpack.c.bf16 %v41_v28, %v40_v27  ;;  %731 = vmatprep.subr.bf16.mxu1 %v795_v26  ;;  %v42_v31 = vld [vmem:[%s1042_s0 + $0x70] sm:$0xff]  ;;  %v43_v32 = vld [vmem:[%s1042_s0 + $0x78] sm:$0xff]  ;;  %v797_v35 = vld [vmem:[%s1045_s3 + $0x8] sm:$0xff]  }
  0x15   :  { %v51_v33 = vpack.c.bf16 %v43_v32, %v42_v31  ;;  %v796_v34 = vld [vmem:[%s1045_s3 + $0x10] sm:$0xff]   ;;  %v798_v36 = vld [vmem:[%s1045_s3] sm:$0xff]   ;;  %v799_v37 = vld [vmem:[%s1047_s5 + $0x38] sm:$0xff]  }
  0x16   :  { %v800_v38 = vld [vmem:[%s1047_s5 + $0x30] sm:$0xff]   ;;  %755 = vmatprep.subr.bf16.mxu0 %v799_v37  ;;  %v801_v39 = vld [vmem:[%s1047_s5 + $0x28] sm:$0xff]   ;;  %v802_v40 = vld [vmem:[%s1047_s5 + $0x20] sm:$0xff]  }
  0x17   :  { %732 = vmatpush3.bf16.msra.mxu1 %v795_v26  ;;  %756 = vmatpush3.bf16.msra.mxu0 %v799_v37  ;;  %v803_v41 = vld [vmem:[%s1047_s5 + $0x18] sm:$0xff]   ;;  %v637_v44 = vld [vmem:[%s1044_s2] ss:$0 sm:$0xff] }
  0x18   :  { %733 = vmatprep.subr.bf16.mxu1 %v796_v34  ;;  %757 = vmatprep.subr.bf16.mxu0 %v800_v38  ;;  %v806_v37 = vld [vmem:[%s1047_s5] sm:$0xff]  }
  0x19   :  { %716 = vmatmul.mubr.msk.bf16.gmra.mxu0 %vm60_vm2, %v49_v29 }
  0x1a   :  { %719 = vmatprep.mubr.msk.bf16.mxu0 %vm60_vm2, %v50_v30 }
  0x1b   :  { %734 = vmatpush3.bf16.msra.mxu1 %v796_v34  ;;  %758 = vmatpush3.bf16.msra.mxu0 %v800_v38 }
  0x1c   :  { %735 = vmatprep.subr.bf16.mxu1 %v797_v35  ;;  %759 = vmatprep.subr.bf16.mxu0 %v801_v39 }
  0x1f   :  { %736 = vmatpush3.bf16.msra.mxu1 %v797_v35  ;;  %760 = vmatpush3.bf16.msra.mxu0 %v801_v39  ;;  %v804_v35 = vld [vmem:[%s1047_s5 + $0x10] sm:$0xff]  }
  0x20   :  { %737 = vmatprep.subr.bf16.mxu1 %v798_v36  ;;  %761 = vmatprep.subr.bf16.mxu0 %v802_v40 }
  0x21   :  { %720 = vmatmul.mubr.msk.bf16.gmra.mxu0 %vm60_vm2, %v51_v33 }
  0x23   :  { %738 = vmatpush3.bf16.msra.mxu1 %v798_v36  ;;  %762 = vmatpush3.bf16.msra.mxu0 %v802_v40  ;;  %v805_v36 = vld [vmem:[%s1047_s5 + $0x8] sm:$0xff]   ;;  %v646_v40 = vld [vmem:[%s1046_s4] ss:$0 sm:$0xff] }
  0x24   :  { %763 = vmatprep.subr.bf16.mxu0 %v803_v41 }
  0x27   :  { %764 = vmatpush3.bf16.msra.mxu0 %v803_v41 }
  0x28   :  { %765 = vmatprep.subr.bf16.mxu0 %v804_v35 }
  0x2b   :  { %766 = vmatpush3.bf16.msra.mxu0 %v804_v35 }
  0x2c   :  { %767 = vmatprep.subr.bf16.mxu0 %v805_v36 }
  0x2f   :  { %768 = vmatpush3.bf16.msra.mxu0 %v805_v36 }
  0x30   :  { %769 = vmatprep.subr.bf16.mxu0 %v806_v37 }
  0x33   :  { %770 = vmatpush3.bf16.msra.mxu0 %v806_v37 }
  0xc9   :  { %v709_v42 = vpop.f32.mrf.mxu0 }
  0xca   :  { %v135_v48 = vadd.f32 %v709_v42, %v637_v44 }
  0xcb   :  { %v126_v43 = vpop.f32.mrf.mxu0 }
  0xcc   :  { %v127_v46 = vadd.f32 %v637_v44, %v126_v43  ;;  %v191_v55 = vmax.f32 %v135_v48, 0.0 }
  0xcd   :  { %v710_v45 = vpop.f32.mrf.mxu0 }
  0xce   :  { %v138_v47 = vadd.f32 %v710_v45, %v637_v44  ;;  %v189_v53 = vmax.f32 %v127_v46, 0.0 }
  0xcf   :  { %v129_v49 = vpop.f32.mrf.mxu0 }
  0xd0   :  { %v130_v50 = vadd.f32 %v637_v44, %v129_v49  ;;  %v192_v51 = vmax.f32 %v138_v47, 0.0 }
  0xd1   :  { %v713_v52 = vpop.f32.mrf.mxu0 }
  0xd2   :  { %v190_v54 = vmax.f32 %v130_v50, 0.0  ;;  %v206_v58 = vpack.c.bf16 %v192_v51, %v191_v55  ;;  %v151_v62 = vadd.f32 %v713_v52, %v637_v44 }
  0xd3   :  { %v142_v56 = vpop.f32.mrf.mxu0 }
  0xd4   :  { %v205_v57 = vpack.c.bf16 %v190_v54, %v189_v53  ;;  %v143_v60 = vadd.f32 %v637_v44, %v142_v56  ;;  %v195_v5 = vmax.f32 %v151_v62, 0.0 }
  0xd5   :  { %v714_v59 = vpop.f32.mrf.mxu0 }
  0xd6   :  { %v154_v61 = vadd.f32 %v714_v59, %v637_v44  ;;  %739 = vmatprep.mubr.bf16.mxu1 %v205_v57  ;;  %v193_v3 = vmax.f32 %v143_v60, 0.0 }
  0xd7   :  { %v145_v63 = vpop.f32.mrf.mxu0  ;;  %740 = vmatmul.mubr.bf16.vlgmr.msra.gmra.mxu1 %v206_v58 }
  0xd8   :  { %v146_v0 = vadd.f32 %v637_v44, %v145_v63  ;;  %v196_v1 = vmax.f32 %v154_v61, 0.0 }
  0xd9   :  { %v717_v2 = vpop.f32.mrf.mxu0 }
  0xda   :  { %v194_v4 = vmax.f32 %v146_v0, 0.0  ;;  %v208_v8 = vpack.c.bf16 %v196_v1, %v195_v5  ;;  %v167_v12 = vadd.f32 %v717_v2, %v637_v44 }
  0xdb   :  { %v158_v6 = vpop.f32.mrf.mxu0 }
  0xdc   :  { %v207_v7 = vpack.c.bf16 %v194_v4, %v193_v3  ;;  %v159_v10 = vadd.f32 %v637_v44, %v158_v6  ;;  %v199_v19 = vmax.f32 %v167_v12, 0.0 }
  0xdd   :  { %v718_v9 = vpop.f32.mrf.mxu0 }
  0xde   :  { %v170_v11 = vadd.f32 %v718_v9, %v637_v44  ;;  %743 = vmatprep.mubr.bf16.mxu1 %v207_v7  ;;  %v197_v17 = vmax.f32 %v159_v10, 0.0 }
  0xdf   :  { %v161_v13 = vpop.f32.mrf.mxu0  ;;  %744 = vmatmul.mubr.bf16.gmra.mxu1 %v208_v8 }
  0xe0   :  { %v162_v14 = vadd.f32 %v637_v44, %v161_v13  ;;  %v200_v15 = vmax.f32 %v170_v11, 0.0 }
  0xe1   :  { %v721_v16 = vpop.f32.mrf.mxu0 }
  0xe2   :  { %v198_v18 = vmax.f32 %v162_v14, 0.0  ;;  %v210_v22 = vpack.c.bf16 %v200_v15, %v199_v19  ;;  %v183_v26 = vadd.f32 %v721_v16, %v637_v44 }
  0xe3   :  { %v174_v20 = vpop.f32.mrf.mxu0 }
  0xe4   :  { %v209_v21 = vpack.c.bf16 %v198_v18, %v197_v17  ;;  %v175_v24 = vadd.f32 %v637_v44, %v174_v20  ;;  %v203_v32 = vmax.f32 %v183_v26, 0.0 }
  0xe5   :  { %v722_v23 = vpop.f32.mrf.mxu0 }
  0xe6   :  { %v186_v25 = vadd.f32 %v722_v23, %v637_v44  ;;  %747 = vmatprep.mubr.bf16.mxu1 %v209_v21  ;;  %v201_v30 = vmax.f32 %v175_v24, 0.0 }
  0xe7   :  { %v177_v27 = vpop.f32.mrf.mxu0  ;;  %748 = vmatmul.mubr.bf16.gmra.mxu1 %v210_v22 }
  0xe8   :  { %v178_v28 = vadd.f32 %v637_v44, %v177_v27  ;;  %v204_v29 = vmax.f32 %v186_v25, 0.0 }
  0xea   :  { %v202_v31 = vmax.f32 %v178_v28, 0.0  ;;  %v212_v34 = vpack.c.bf16 %v204_v29, %v203_v32 }
  0xec   :  { %v211_v33 = vpack.c.bf16 %v202_v31, %v201_v30  ;;  %v1021_v31 = vld [vmem:[%s1048_s6] ss:$0 sm:$0xff]  ;;  %s862_s6 = smov [#allocation2]  }
  0xed   :  { %s626_s19 = sshll.u32 %s862_s6, 4  ;;  %s627_s19 = int_to_ptr.vmem [resolvable:$true] %s626_s19 }
  0xee   :  { %751 = vmatprep.mubr.bf16.mxu1 %v211_v33  ;;  %s839_s20 = scalar_lea.vmem %s627_s19, 2048  ;;  %p844_p1 = scmp.lt.s32.totalorder %s627_s19, %s627_s19 }
  0xef   :  { %752 = vmatmul.mubr.bf16.gmra.mxu1 %v212_v34  ;;  %p840_p0 = scmp.ne.s32.totalorder %s627_s19, %s839_s20  ;;  %p845_p2 = scmp.lt.s32.totalorder %s839_s20, %s839_s20 }
  0xf1   :  { %p846_p3 = por %p845_p2, %p844_p1 }
  0xf3   :  { %p847_p4 = pnand %p846_p3, %p840_p0 }
 0x197   :  { %v741_v38 = vpop.f32.mrf.mxu1 }
 0x198   :  { %v327_v44 = vadd.f32 %v741_v38, %v646_v40 }
 0x199   :  { %v318_v39 = vpop.f32.mrf.mxu1 }
 0x19a   :  { %v319_v42 = vadd.f32 %v646_v40, %v318_v39  ;;  %v383_v51 = vmax.f32 %v327_v44, 0.0 }
 0x19b   :  { %v742_v41 = vpop.f32.mrf.mxu1 }
 0x19c   :  { %v330_v43 = vadd.f32 %v742_v41, %v646_v40  ;;  %v381_v49 = vmax.f32 %v319_v42, 0.0 }
 0x19d   :  { %v321_v45 = vpop.f32.mrf.mxu1 }
 0x19e   :  { %v322_v46 = vadd.f32 %v646_v40, %v321_v45  ;;  %v384_v47 = vmax.f32 %v330_v43, 0.0 }
 0x19f   :  { %v745_v48 = vpop.f32.mrf.mxu1 }
 0x1a0   :  { %v382_v50 = vmax.f32 %v322_v46, 0.0  ;;  %v398_v54 = vpack.c.bf16 %v384_v47, %v383_v51  ;;  %v343_v58 = vadd.f32 %v745_v48, %v646_v40 }
 0x1a1   :  { %v334_v52 = vpop.f32.mrf.mxu1 }
 0x1a2   :  { %v397_v53 = vpack.c.bf16 %v382_v50, %v381_v49  ;;  %v335_v56 = vadd.f32 %v646_v40, %v334_v52  ;;  %v387_v1 = vmax.f32 %v343_v58, 0.0 }
 0x1a3   :  { %v746_v55 = vpop.f32.mrf.mxu1 }
 0x1a4   :  { %v346_v57 = vadd.f32 %v746_v55, %v646_v40  ;;  %771 = vmatprep.mubr.bf16.mxu0 %v397_v53  ;;  %v385_v63 = vmax.f32 %v335_v56, 0.0 }
 0x1a5   :  { %v337_v59 = vpop.f32.mrf.mxu1  ;;  %772 = vmatmul.mubr.bf16.vlgmr.msra.gmra.mxu0 %v398_v54 }
 0x1a6   :  { %v338_v60 = vadd.f32 %v646_v40, %v337_v59  ;;  %v388_v61 = vmax.f32 %v346_v57, 0.0 }
 0x1a7   :  { %v749_v62 = vpop.f32.mrf.mxu1 }
 0x1a8   :  { %v386_v0 = vmax.f32 %v338_v60, 0.0  ;;  %v400_v4 = vpack.c.bf16 %v388_v61, %v387_v1  ;;  %v359_v8 = vadd.f32 %v749_v62, %v646_v40 }
 0x1a9   :  { %v350_v2 = vpop.f32.mrf.mxu1 }
 0x1aa   :  { %v399_v3 = vpack.c.bf16 %v386_v0, %v385_v63  ;;  %v351_v6 = vadd.f32 %v646_v40, %v350_v2  ;;  %v391_v15 = vmax.f32 %v359_v8, 0.0 }
 0x1ab   :  { %v750_v5 = vpop.f32.mrf.mxu1 }
 0x1ac   :  { %v362_v7 = vadd.f32 %v750_v5, %v646_v40  ;;  %775 = vmatprep.mubr.bf16.mxu0 %v399_v3  ;;  %v389_v13 = vmax.f32 %v351_v6, 0.0 }
 0x1ad   :  { %v353_v9 = vpop.f32.mrf.mxu1  ;;  %776 = vmatmul.mubr.bf16.gmra.mxu0 %v400_v4 }
 0x1ae   :  { %v354_v10 = vadd.f32 %v646_v40, %v353_v9  ;;  %v392_v11 = vmax.f32 %v362_v7, 0.0 }
 0x1af   :  { %v753_v12 = vpop.f32.mrf.mxu1 }
 0x1b0   :  { %v390_v14 = vmax.f32 %v354_v10, 0.0  ;;  %v402_v18 = vpack.c.bf16 %v392_v11, %v391_v15  ;;  %v375_v22 = vadd.f32 %v753_v12, %v646_v40 }
 0x1b1   :  { %v366_v16 = vpop.f32.mrf.mxu1 }
 0x1b2   :  { %v401_v17 = vpack.c.bf16 %v390_v14, %v389_v13  ;;  %v367_v20 = vadd.f32 %v646_v40, %v366_v16  ;;  %v395_v28 = vmax.f32 %v375_v22, 0.0 }
 0x1b3   :  { %v754_v19 = vpop.f32.mrf.mxu1 }
 0x1b4   :  { %v378_v21 = vadd.f32 %v754_v19, %v646_v40  ;;  %779 = vmatprep.mubr.bf16.mxu0 %v401_v17  ;;  %v393_v26 = vmax.f32 %v367_v20, 0.0 }
 0x1b5   :  { %v369_v23 = vpop.f32.mrf.mxu1  ;;  %780 = vmatmul.mubr.bf16.gmra.mxu0 %v402_v18 }
 0x1b6   :  { %v370_v24 = vadd.f32 %v646_v40, %v369_v23  ;;  %v396_v25 = vmax.f32 %v378_v21, 0.0 }
 0x1b8   :  { %v394_v27 = vmax.f32 %v370_v24, 0.0  ;;  %v404_v30 = vpack.c.bf16 %v396_v25, %v395_v28 }
 0x1ba   :  { %v403_v29 = vpack.c.bf16 %v394_v27, %v393_v26 }
 0x1bc   :  { %783 = vmatprep.mubr.bf16.mxu0 %v403_v29 }
 0x1bd   :  { %784 = vmatmul.mubr.bf16.gmra.mxu0 %v404_v30 }
 0x265   :  { %v773_v32 = vpop.f32.mrf.mxu0 }
 0x266   :  { %v519_v33 = vadd.f32 %v773_v32, %v1021_v31 }
 0x267   :  { %v510_v34 = vpop.f32.mrf.mxu0 }
 0x268   :  { %807 = vtanh.f32 %v519_v33  ;;  %v511_v35 = vadd.f32 %v1021_v31, %v510_v34 }
 0x269   :  { %v774_v36 = vpop.f32.mrf.mxu0 }
 0x26a   :  { %809 = vtanh.f32 %v511_v35  ;;  %v522_v37 = vadd.f32 %v774_v36, %v1021_v31 }
 0x26b   :  { %v513_v38 = vpop.f32.mrf.mxu0 }
 0x26c   :  { %811 = vtanh.f32 %v522_v37  ;;  %v514_v39 = vadd.f32 %v1021_v31, %v513_v38 }
 0x26d   :  { %v777_v40 = vpop.f32.mrf.mxu0 }
 0x26e   :  { %813 = vtanh.f32 %v514_v39  ;;  %v535_v41 = vadd.f32 %v777_v40, %v1021_v31 }
 0x26f   :  { %v526_v42 = vpop.f32.mrf.mxu0 }
 0x270   :  { %815 = vtanh.f32 %v535_v41  ;;  %v527_v43 = vadd.f32 %v1021_v31, %v526_v42 }
 0x271   :  { %v778_v44 = vpop.f32.mrf.mxu0 }
 0x272   :  { %817 = vtanh.f32 %v527_v43  ;;  %v538_v45 = vadd.f32 %v778_v44, %v1021_v31 }
 0x273   :  { %v529_v46 = vpop.f32.mrf.mxu0 }
 0x274   :  { %819 = vtanh.f32 %v538_v45  ;;  %v530_v47 = vadd.f32 %v1021_v31, %v529_v46 }
 0x275   :  { %v808_v48 = vpop.eup %807  ;;  %v781_v49 = vpop.f32.mrf.mxu0 }
 0x276   :  { %v591_v50 = vmul.f32 0.1, %v808_v48  ;;  %821 = vtanh.f32 %v530_v47  ;;  %v551_v51 = vadd.f32 %v781_v49, %v1021_v31 }
 0x277   :  { %v810_v52 = vpop.eup %809  ;;  %v542_v53 = vpop.f32.mrf.mxu0 }
 0x278   :  { %607 = vst [vmem:[#allocation2 + $0x10] sm:$0xff] %v591_v50  ;;  %v589_v54 = vmul.f32 0.1, %v810_v52  ;;  %823 = vtanh.f32 %v551_v51  ;;  %v543_v55 = vadd.f32 %v1021_v31, %v542_v53 }
 0x279   :  { %v812_v56 = vpop.eup %811  ;;  %v782_v57 = vpop.f32.mrf.mxu0 }
 0x27a   :  { %605 = vst [vmem:[#allocation2] sm:$0xff] %v589_v54  ;;  %v592_v58 = vmul.f32 0.1, %v812_v56  ;;  %825 = vtanh.f32 %v543_v55  ;;  %v554_v59 = vadd.f32 %v782_v57, %v1021_v31 }
 0x27b   :  { %v814_v60 = vpop.eup %813  ;;  %v545_v61 = vpop.f32.mrf.mxu0 }
 0x27c   :  { %608 = vst [vmem:[#allocation2 + $0x18] sm:$0xff] %v592_v58  ;;  %v590_v62 = vmul.f32 0.1, %v814_v60  ;;  %827 = vtanh.f32 %v554_v59  ;;  %v546_v63 = vadd.f32 %v1021_v31, %v545_v61 }
 0x27d   :  { %v816_v0 = vpop.eup %815  ;;  %v785_v1 = vpop.f32.mrf.mxu0 }
 0x27e   :  { %606 = vst [vmem:[#allocation2 + $0x8] sm:$0xff] %v590_v62  ;;  %v595_v2 = vmul.f32 0.1, %v816_v0  ;;  %829 = vtanh.f32 %v546_v63  ;;  %v567_v3 = vadd.f32 %v785_v1, %v1021_v31 }
 0x27f   :  { %v818_v4 = vpop.eup %817  ;;  %v558_v5 = vpop.f32.mrf.mxu0 }
 0x280   :  { %611 = vst [vmem:[#allocation2 + $0x30] sm:$0xff] %v595_v2  ;;  %v593_v6 = vmul.f32 0.1, %v818_v4  ;;  %831 = vtanh.f32 %v567_v3  ;;  %v559_v7 = vadd.f32 %v1021_v31, %v558_v5 }
 0x281   :  { %v820_v8 = vpop.eup %819  ;;  %v786_v9 = vpop.f32.mrf.mxu0 }
 0x282   :  { %609 = vst [vmem:[#allocation2 + $0x20] sm:$0xff] %v593_v6  ;;  %v596_v10 = vmul.f32 0.1, %v820_v8  ;;  %833 = vtanh.f32 %v559_v7  ;;  %v570_v11 = vadd.f32 %v786_v9, %v1021_v31 }
 0x283   :  { %v822_v12 = vpop.eup %821  ;;  %v561_v13 = vpop.f32.mrf.mxu0 }
 0x284   :  { %612 = vst [vmem:[#allocation2 + $0x38] sm:$0xff] %v596_v10  ;;  %v594_v14 = vmul.f32 0.1, %v822_v12  ;;  %835 = vtanh.f32 %v570_v11  ;;  %v562_v15 = vadd.f32 %v1021_v31, %v561_v13 }
 0x285   :  { %v824_v16 = vpop.eup %823 }
 0x286   :  { %610 = vst [vmem:[#allocation2 + $0x28] sm:$0xff] %v594_v14  ;;  %v599_v17 = vmul.f32 0.1, %v824_v16  ;;  %837 = vtanh.f32 %v562_v15 }
 0x287   :  { %v826_v18 = vpop.eup %825 }
 0x288   :  { %615 = vst [vmem:[#allocation2 + $0x50] sm:$0xff] %v599_v17  ;;  %v597_v19 = vmul.f32 0.1, %v826_v18 }
 0x289   :  { %v828_v20 = vpop.eup %827 }
 0x28a   :  { %613 = vst [vmem:[#allocation2 + $0x40] sm:$0xff] %v597_v19  ;;  %v600_v21 = vmul.f32 0.1, %v828_v20 }
 0x28b   :  { %v830_v22 = vpop.eup %829 }
 0x28c   :  { %616 = vst [vmem:[#allocation2 + $0x58] sm:$0xff] %v600_v21  ;;  %v598_v23 = vmul.f32 0.1, %v830_v22 }
 0x28d   :  { %v832_v24 = vpop.eup %831 }
 0x28e   :  { %614 = vst [vmem:[#allocation2 + $0x48] sm:$0xff] %v598_v23  ;;  %v603_v25 = vmul.f32 0.1, %v832_v24 }
 0x28f   :  { %v834_v26 = vpop.eup %833 }
 0x290   :  { %619 = vst [vmem:[#allocation2 + $0x70] sm:$0xff] %v603_v25  ;;  %v601_v27 = vmul.f32 0.1, %v834_v26 }
 0x291   :  { %v836_v28 = vpop.eup %835 }
 0x292   :  { %617 = vst [vmem:[#allocation2 + $0x60] sm:$0xff] %v601_v27  ;;  %v604_v29 = vmul.f32 0.1, %v836_v28 }
 0x293   :  { %v838_v30 = vpop.eup %837 }
 0x294   :  { %620 = vst [vmem:[#allocation2 + $0x78] sm:$0xff] %v604_v29  ;;  %v602_v31 = vmul.f32 0.1, %v838_v30 }
 0x296   :  { %618 = vst [vmem:[#allocation2 + $0x68] sm:$0xff] %v602_v31 }
 0x297   :  { %850 = shalt.err (!%p847_p4)
}
 0x298   :  { %s863_s21 = smov 128   ;;  %s864_s22 = smov 8  }
 0x299   :  { %632 = dma.vmem_to_hbm [thread:$0]  %s627_s19, 2048, %s1049_s7, [#allocation3], %s863_s21, %s863_s21, %s864_s22  }
 0x29a   :  { %859 = dma.done.wait [#allocation3], 2048  }
 0x29b   :  { %860 = vsyncadd [#allocation3], 4294965248 }
 0x29c   :  { %636 = vsyncpa [#allocation3], 1 }

</bundles_post_ra>
